<compile_context>
chip_gen: v7x
topology: tpu7x:2x2x1
jax: 0.10.0
libtpu: 0.0.40
codegen_flags: <defaults>
</compile_context>

<pallas_src>
import functools

import jax
import jax.numpy as jnp
from jax.experimental import pallas as pl
from jax.experimental.pallas import tpu as pltpu

EPS = 1e-5  # nn.InstanceNorm2d default


def resnet_block_kernel(x_ref, w1_ref, b1_ref, w2_ref, b2_ref, o_ref,
                        vp_ref, hs_ref, col_ref, *, H, W, PAD):
    """Processes one batch sample per grid step.

    x_ref  : (1, C, H*W)       activation, pixels (H*W) on the lane axis
    w*_ref : (C, 9*C)          conv weights, [cout, (kh*3 + kw)*C + cin]
    b*_ref : (C, 1)            conv bias
    o_ref  : (1, C, H*W)       output
    vp_ref : (C, 2*PAD + H*W)  scratch: activation staged at lane offset PAD
    hs_ref : (C, 2*PAD + H*W)  scratch: staging for vertically shifted rows
    col_ref: (9*C, H*W)        scratch: im2col matrix (one C-row block per tap)
    """
    C = x_ref.shape[1]
    HW = H * W
    x = x_ref[0]  # (C, HW) float32

    # Boundary masks for reflection padding (hoisted, computed once per sample).
    lane = jax.lax.broadcasted_iota(jnp.int32, (C, HW), 1)
    col_id = lane % W
    first_col = col_id == 0
    last_col = col_id == W - 1
    first_row = lane < W
    last_row = lane >= HW - W

    # Zero the staging buffers so the (masked-out) guard lanes are defined.
    vp_ref[...] = jnp.zeros_like(vp_ref)
    hs_ref[...] = jnp.zeros_like(hs_ref)

    def conv_inorm_relu(v, w_ref, b_ref):
        # Stage v once at an aligned lane offset; every spatial tap is then an
        # offset-window load (lane shift) plus a reflection select.
        vp_ref[:, PAD:PAD + HW] = v
        u = vp_ref[:, PAD - W:PAD - W + HW]   # u[p] = v[p - W]
        d = vp_ref[:, PAD + W:PAD + W + HW]   # d[p] = v[p + W]
        v_shift = {
            -1: jnp.where(first_row, d, u),   # row -1 reflects to row 1
            0: v,
            1: jnp.where(last_row, u, d),     # row H reflects to row H-2
        }

        # Build the im2col matrix (9*C, HW) in VMEM (lane-aligned stores only).
        for dy in (-1, 0, 1):
            vy = v_shift[dy]
            if dy == 0:
                src = vp_ref                   # v is already staged
            else:
                hs_ref[:, PAD:PAD + HW] = vy
                src = hs_ref
            sl = src[:, PAD + 1:PAD + 1 + HW]  # sl[p] = vy[p + 1]
            sr = src[:, PAD - 1:PAD - 1 + HW]  # sr[p] = vy[p - 1]
            taps = {
                -1: jnp.where(first_col, sl, sr),  # col -1 reflects to col 1
                0: vy,
                1: jnp.where(last_col, sr, sl),    # col W reflects to col W-2
            }
            for dx in (-1, 0, 1):
                tap = (dy + 1) * 3 + (dx + 1)
                col_ref[tap * C:(tap + 1) * C, :] = taps[dx]

        # Conv2d(3x3) == one MXU matmul with the bias fused into the epilogue.
        y = jnp.dot(w_ref[...], col_ref[...],
                    preferred_element_type=jnp.float32) + b_ref[...]

        # InstanceNorm2d: per-channel stats over the spatial (lane) axis, f32.
        mean = jnp.mean(y, axis=1, keepdims=True)
        var = jnp.mean(jnp.square(y - mean), axis=1, keepdims=True)
        y = (y - mean) * jax.lax.rsqrt(var + EPS)

        # ReLU
        return jnp.maximum(y, 0.0)

    h = conv_inorm_relu(x, w1_ref, b1_ref)
    h = conv_inorm_relu(h, w2_ref, b2_ref)

    # Residual connection; the (C, HW) store is lane-dense / unmasked.
    o_ref[0] = x + h


def resnet_block_cyclegan(x_nchw, w1, b1, w2, b2):
    """x_nchw: (N, C, H, W) float32; w*: (C, C, 3, 3) OIHW; b*: (C,)."""
    N, C, H, W = x_nchw.shape
    HW = H * W
    PAD = max(128, ((W + 127) // 128) * 128)  # 128-aligned staging offset >= W

    # Zero-copy lane-dense view of the NCHW input (no transpose round trips).
    x = x_nchw.reshape(N, C, HW).astype(jnp.float32)
    # OIHW -> (Cout, 9*Cin), row order (kh*3 + kw)*C + cin to match the im2col.
    wm1 = jnp.transpose(w1, (0, 2, 3, 1)).reshape(C, 9 * C).astype(jnp.float32)
    wm2 = jnp.transpose(w2, (0, 2, 3, 1)).reshape(C, 9 * C).astype(jnp.float32)
    b1c = b1.reshape(C, 1).astype(jnp.float32)
    b2c = b2.reshape(C, 1).astype(jnp.float32)

    kernel = functools.partial(resnet_block_kernel, H=H, W=W, PAD=PAD)

    out = pl.pallas_call(
        kernel,
        out_shape=jax.ShapeDtypeStruct((N, C, HW), jnp.float32),
        grid_spec=pltpu.PrefetchScalarGridSpec(
            num_scalar_prefetch=0,
            grid=(N,),
            in_specs=[
                pl.BlockSpec((1, C, HW), lambda n: (n, 0, 0)),
                pl.BlockSpec((C, 9 * C), lambda n: (0, 0)),
                pl.BlockSpec((C, 1), lambda n: (0, 0)),
                pl.BlockSpec((C, 9 * C), lambda n: (0, 0)),
                pl.BlockSpec((C, 1), lambda n: (0, 0)),
            ],
            out_specs=pl.BlockSpec((1, C, HW), lambda n: (n, 0, 0)),
            scratch_shapes=[
                pltpu.VMEM((C, 2 * PAD + HW), jnp.float32),  # staged activation
                pltpu.VMEM((C, 2 * PAD + HW), jnp.float32),  # staged row shifts
                pltpu.VMEM((9 * C, HW), jnp.float32),        # im2col matrix
            ],
        ),
        compiler_params=pltpu.CompilerParams(
            dimension_semantics=("parallel",)),
    )(x, wm1, b1c, wm2, b2c)

    return out.reshape(N, C, H, W)  # contiguous reshape back to NCHW


def reference(x_nchw, w1, b1, w2, b2):
    """Pure-JAX reference (NCHW, like the PyTorch module)."""
    def refl_pad(x):
        return jnp.pad(x, ((0, 0), (0, 0), (1, 1), (1, 1)), mode="reflect")

    def conv(x, w, b):
        y = jax.lax.conv_general_dilated(
            x, w, (1, 1), "VALID",
            dimension_numbers=("NCHW", "OIHW", "NCHW"),
            precision=jax.lax.Precision.HIGHEST)
        return y + b[None, :, None, None]

    def inorm(x):
        mean = jnp.mean(x, axis=(2, 3), keepdims=True)
        var = jnp.mean((x - mean) ** 2, axis=(2, 3), keepdims=True)
        return (x - mean) / jnp.sqrt(var + EPS)

    h = jnp.maximum(inorm(conv(refl_pad(x_nchw), w1, b1)), 0.0)
    h = jnp.maximum(inorm(conv(refl_pad(h), w2, b2)), 0.0)
    return x_nchw + h


if __name__ == "__main__":
    N, C, H, W = 2, 8, 16, 16  # num_filters = 8

    key = jax.random.PRNGKey(0)
    kx, kw1, kb1, kw2, kb2 = jax.random.split(key, 5)
    x = jax.random.normal(kx, (N, C, H, W), dtype=jnp.float32)
    # nn.Conv2d parameter shapes: weight (Cout, Cin, 3, 3), bias (Cout,)
    w1 = 0.1 * jax.random.normal(kw1, (C, C, 3, 3), dtype=jnp.float32)
    b1 = 0.1 * jax.random.normal(kb1, (C,), dtype=jnp.float32)
    w2 = 0.1 * jax.random.normal(kw2, (C, C, 3, 3), dtype=jnp.float32)
    b2 = 0.1 * jax.random.normal(kb2, (C,), dtype=jnp.float32)

    out = jax.block_until_ready(resnet_block_cyclegan(x, w1, b1, w2, b2))
    ref = jax.block_until_ready(reference(x, w1, b1, w2, b2))

    assert out.shape == (N, C, H, W)
    assert bool(jnp.all(jnp.isfinite(out)))
    err = float(jnp.max(jnp.abs(out - ref)))
    assert bool(jnp.allclose(out, ref, rtol=1e-3, atol=1e-3)), (
        f"max abs err = {err}")

    print("KERNEL_OK")
</pallas_src>

<mosaic_0001>
module attributes {stable_mosaic.version = 11 : i64} {
  func.func @resnet_block_kernel(%arg0: i32, %arg1: memref<1x8x256xf32, #tpu.memory_space<vmem>>, %arg2: memref<8x72xf32, #tpu.memory_space<vmem>>, %arg3: memref<8x1xf32, #tpu.memory_space<vmem>>, %arg4: memref<8x72xf32, #tpu.memory_space<vmem>>, %arg5: memref<8x1xf32, #tpu.memory_space<vmem>>, %arg6: memref<1x8x256xf32, #tpu.memory_space<vmem>>, %arg7: memref<8x512xf32, #tpu.memory_space<vmem>>, %arg8: memref<8x512xf32, #tpu.memory_space<vmem>>, %arg9: memref<72x256xf32, #tpu.memory_space<vmem>>) attributes {dimension_semantics = [#tpu.dimension_semantics<parallel>], iteration_bounds = array<i64: 2>, scalar_prefetch = 0 : i64, scratch_operands = 3 : i64, tpu.core_type = #tpu.core_type<tc>, window_params = [{transform_indices = @transform_0, window_bounds = array<i64: 1, 8, 256>}, {pipeline_mode = #tpu.pipeline_mode<synchronous>, transform_indices = @transform_1, window_bounds = array<i64: 8, 72>}, {pipeline_mode = #tpu.pipeline_mode<synchronous>, transform_indices = @transform_2, window_bounds = array<i64: 8, 1>}, {pipeline_mode = #tpu.pipeline_mode<synchronous>, transform_indices = @transform_3, window_bounds = array<i64: 8, 72>}, {pipeline_mode = #tpu.pipeline_mode<synchronous>, transform_indices = @transform_4, window_bounds = array<i64: 8, 1>}, {transform_indices = @transform_5, window_bounds = array<i64: 1, 8, 256>}]} {
    %c0 = arith.constant 0 : index
    %c0_0 = arith.constant 0 : index
    %c0_1 = arith.constant 0 : index
    %0 = vector.load %arg1[%c0, %c0_0, %c0_1] : memref<1x8x256xf32, #tpu.memory_space<vmem>>, vector<1x8x256xf32>
    %1 = vector.shape_cast %0 : vector<1x8x256xf32> to vector<8x256xf32>
    %2 = tpu.iota {dimensions = array<i32: 1>} : vector<8x256xi32>
    %c16_i32 = arith.constant 16 : i32
    %c0_i32 = arith.constant 0 : i32
    %3 = arith.cmpi eq, %c16_i32, %c0_i32 : i32
    %c1_i32 = arith.constant 1 : i32
    %4 = arith.select %3, %c1_i32, %c16_i32 : i32
    %5 = vector.broadcast %4 : i32 to vector<8x256xi32>
    %6 = arith.remsi %2, %5 : vector<8x256xi32>
    %c0_i32_2 = arith.constant 0 : i32
    %7 = vector.broadcast %c0_i32_2 : i32 to vector<8x256xi32>
    %8 = arith.cmpi ne, %6, %7 : vector<8x256xi32>
    %c0_i32_3 = arith.constant 0 : i32
    %9 = vector.broadcast %c0_i32_3 : i32 to vector<8x256xi32>
    %10 = arith.cmpi slt, %6, %9 : vector<8x256xi32>
    %c0_i32_4 = arith.constant 0 : i32
    %11 = arith.cmpi slt, %4, %c0_i32_4 : i32
    %12 = vector.broadcast %11 : i1 to vector<8x256xi1>
    %13 = vector.broadcast %12 : vector<8x256xi1> to vector<8x256xi1>
    %14 = arith.xori %10, %13 : vector<8x256xi1>
    %15 = arith.andi %14, %8 : vector<8x256xi1>
    %16 = vector.broadcast %4 : i32 to vector<8x256xi32>
    %17 = arith.addi %6, %16 : vector<8x256xi32>
    %18 = arith.select %15, %17, %6 : vector<8x256xi1>, vector<8x256xi32>
    %c0_i32_5 = arith.constant 0 : i32
    %19 = vector.broadcast %c0_i32_5 : i32 to vector<8x256xi32>
    %20 = arith.cmpi eq, %18, %19 : vector<8x256xi32>
    %c15_i32 = arith.constant 15 : i32
    %21 = vector.broadcast %c15_i32 : i32 to vector<8x256xi32>
    %22 = arith.cmpi eq, %18, %21 : vector<8x256xi32>
    %c16_i32_6 = arith.constant 16 : i32
    %23 = vector.broadcast %c16_i32_6 : i32 to vector<8x256xi32>
    %24 = arith.cmpi slt, %2, %23 : vector<8x256xi32>
    %c240_i32 = arith.constant 240 : i32
    %25 = vector.broadcast %c240_i32 : i32 to vector<8x256xi32>
    %26 = arith.cmpi sge, %2, %25 : vector<8x256xi32>
    %cst = arith.constant 0.000000e+00 : f32
    %27 = vector.broadcast %cst : f32 to vector<8x512xf32>
    %c0_7 = arith.constant 0 : index
    %c0_8 = arith.constant 0 : index
    %28 = vector.load %arg7[%c0_7, %c0_8] : memref<8x512xf32, #tpu.memory_space<vmem>>, vector<8x512xf32>
    tpu.vector_store %arg7[%c0_7, %c0_8], %27 {strides = array<i32>} : memref<8x512xf32, #tpu.memory_space<vmem>>, vector<8x512xf32>,
    %cst_9 = arith.constant 0.000000e+00 : f32
    %29 = vector.broadcast %cst_9 : f32 to vector<8x512xf32>
    %c0_10 = arith.constant 0 : index
    %c0_11 = arith.constant 0 : index
    %30 = vector.load %arg8[%c0_10, %c0_11] : memref<8x512xf32, #tpu.memory_space<vmem>>, vector<8x512xf32>
    tpu.vector_store %arg8[%c0_10, %c0_11], %29 {strides = array<i32>} : memref<8x512xf32, #tpu.memory_space<vmem>>, vector<8x512xf32>,
    %c0_12 = arith.constant 0 : index
    %c128 = arith.constant 128 : index
    %31 = vector.load %arg7[%c0_12, %c128] : memref<8x512xf32, #tpu.memory_space<vmem>>, vector<8x256xf32>
    tpu.vector_store %arg7[%c0_12, %c128], %1 {strides = array<i32>} : memref<8x512xf32, #tpu.memory_space<vmem>>, vector<8x256xf32>,
    %c0_13 = arith.constant 0 : index
    %c112 = arith.constant 112 : index
    %32 = vector.load %arg7[%c0_13, %c112] : memref<8x512xf32, #tpu.memory_space<vmem>>, vector<8x256xf32>
    %c0_14 = arith.constant 0 : index
    %c144 = arith.constant 144 : index
    %33 = vector.load %arg7[%c0_14, %c144] : memref<8x512xf32, #tpu.memory_space<vmem>>, vector<8x256xf32>
    %34 = arith.select %24, %33, %32 : vector<8x256xi1>, vector<8x256xf32>
    %35 = arith.select %26, %32, %33 : vector<8x256xi1>, vector<8x256xf32>
    %c0_15 = arith.constant 0 : index
    %c128_16 = arith.constant 128 : index
    %36 = vector.load %arg8[%c0_15, %c128_16] : memref<8x512xf32, #tpu.memory_space<vmem>>, vector<8x256xf32>
    tpu.vector_store %arg8[%c0_15, %c128_16], %34 {strides = array<i32>} : memref<8x512xf32, #tpu.memory_space<vmem>>, vector<8x256xf32>,
    %c0_17 = arith.constant 0 : index
    %c129 = arith.constant 129 : index
    %37 = vector.load %arg8[%c0_17, %c129] : memref<8x512xf32, #tpu.memory_space<vmem>>, vector<8x256xf32>
    %c0_18 = arith.constant 0 : index
    %c127 = arith.constant 127 : index
    %38 = vector.load %arg8[%c0_18, %c127] : memref<8x512xf32, #tpu.memory_space<vmem>>, vector<8x256xf32>
    %39 = arith.select %20, %37, %38 : vector<8x256xi1>, vector<8x256xf32>
    %40 = arith.select %22, %38, %37 : vector<8x256xi1>, vector<8x256xf32>
    %c0_19 = arith.constant 0 : index
    %c0_20 = arith.constant 0 : index
    %41 = vector.load %arg9[%c0_19, %c0_20] : memref<72x256xf32, #tpu.memory_space<vmem>>, vector<8x256xf32>
    tpu.vector_store %arg9[%c0_19, %c0_20], %39 {strides = array<i32>} : memref<72x256xf32, #tpu.memory_space<vmem>>, vector<8x256xf32>,
    %c8 = arith.constant 8 : index
    %c0_21 = arith.constant 0 : index
    %42 = vector.load %arg9[%c8, %c0_21] : memref<72x256xf32, #tpu.memory_space<vmem>>, vector<8x256xf32>
    tpu.vector_store %arg9[%c8, %c0_21], %34 {strides = array<i32>} : memref<72x256xf32, #tpu.memory_space<vmem>>, vector<8x256xf32>,
    %c16 = arith.constant 16 : index
    %c0_22 = arith.constant 0 : index
    %43 = vector.load %arg9[%c16, %c0_22] : memref<72x256xf32, #tpu.memory_space<vmem>>, vector<8x256xf32>
    tpu.vector_store %arg9[%c16, %c0_22], %40 {strides = array<i32>} : memref<72x256xf32, #tpu.memory_space<vmem>>, vector<8x256xf32>,
    %c0_23 = arith.constant 0 : index
    %c129_24 = arith.constant 129 : index
    %44 = vector.load %arg7[%c0_23, %c129_24] : memref<8x512xf32, #tpu.memory_space<vmem>>, vector<8x256xf32>
    %c0_25 = arith.constant 0 : index
    %c127_26 = arith.constant 127 : index
    %45 = vector.load %arg7[%c0_25, %c127_26] : memref<8x512xf32, #tpu.memory_space<vmem>>, vector<8x256xf32>
    %46 = arith.select %20, %44, %45 : vector<8x256xi1>, vector<8x256xf32>
    %47 = arith.select %22, %45, %44 : vector<8x256xi1>, vector<8x256xf32>
    %c24 = arith.constant 24 : index
    %c0_27 = arith.constant 0 : index
    %48 = vector.load %arg9[%c24, %c0_27] : memref<72x256xf32, #tpu.memory_space<vmem>>, vector<8x256xf32>
    tpu.vector_store %arg9[%c24, %c0_27], %46 {strides = array<i32>} : memref<72x256xf32, #tpu.memory_space<vmem>>, vector<8x256xf32>,
    %c32 = arith.constant 32 : index
    %c0_28 = arith.constant 0 : index
    %49 = vector.load %arg9[%c32, %c0_28] : memref<72x256xf32, #tpu.memory_space<vmem>>, vector<8x256xf32>
    tpu.vector_store %arg9[%c32, %c0_28], %1 {strides = array<i32>} : memref<72x256xf32, #tpu.memory_space<vmem>>, vector<8x256xf32>,
    %c40 = arith.constant 40 : index
    %c0_29 = arith.constant 0 : index
    %50 = vector.load %arg9[%c40, %c0_29] : memref<72x256xf32, #tpu.memory_space<vmem>>, vector<8x256xf32>
    tpu.vector_store %arg9[%c40, %c0_29], %47 {strides = array<i32>} : memref<72x256xf32, #tpu.memory_space<vmem>>, vector<8x256xf32>,
    %c0_30 = arith.constant 0 : index
    %c128_31 = arith.constant 128 : index
    %51 = vector.load %arg8[%c0_30, %c128_31] : memref<8x512xf32, #tpu.memory_space<vmem>>, vector<8x256xf32>
    tpu.vector_store %arg8[%c0_30, %c128_31], %35 {strides = array<i32>} : memref<8x512xf32, #tpu.memory_space<vmem>>, vector<8x256xf32>,
    %c0_32 = arith.constant 0 : index
    %c129_33 = arith.constant 129 : index
    %52 = vector.load %arg8[%c0_32, %c129_33] : memref<8x512xf32, #tpu.memory_space<vmem>>, vector<8x256xf32>
    %c0_34 = arith.constant 0 : index
    %c127_35 = arith.constant 127 : index
    %53 = vector.load %arg8[%c0_34, %c127_35] : memref<8x512xf32, #tpu.memory_space<vmem>>, vector<8x256xf32>
    %54 = arith.select %20, %52, %53 : vector<8x256xi1>, vector<8x256xf32>
    %55 = arith.select %22, %53, %52 : vector<8x256xi1>, vector<8x256xf32>
    %c48 = arith.constant 48 : index
    %c0_36 = arith.constant 0 : index
    %56 = vector.load %arg9[%c48, %c0_36] : memref<72x256xf32, #tpu.memory_space<vmem>>, vector<8x256xf32>
    tpu.vector_store %arg9[%c48, %c0_36], %54 {strides = array<i32>} : memref<72x256xf32, #tpu.memory_space<vmem>>, vector<8x256xf32>,
    %c56 = arith.constant 56 : index
    %c0_37 = arith.constant 0 : index
    %57 = vector.load %arg9[%c56, %c0_37] : memref<72x256xf32, #tpu.memory_space<vmem>>, vector<8x256xf32>
    tpu.vector_store %arg9[%c56, %c0_37], %35 {strides = array<i32>} : memref<72x256xf32, #tpu.memory_space<vmem>>, vector<8x256xf32>,
    %c64 = arith.constant 64 : index
    %c0_38 = arith.constant 0 : index
    %58 = vector.load %arg9[%c64, %c0_38] : memref<72x256xf32, #tpu.memory_space<vmem>>, vector<8x256xf32>
    tpu.vector_store %arg9[%c64, %c0_38], %55 {strides = array<i32>} : memref<72x256xf32, #tpu.memory_space<vmem>>, vector<8x256xf32>,
    %c0_39 = arith.constant 0 : index
    %c0_40 = arith.constant 0 : index
    %59 = vector.load %arg2[%c0_39, %c0_40] : memref<8x72xf32, #tpu.memory_space<vmem>>, vector<8x72xf32>
    %c0_41 = arith.constant 0 : index
    %c0_42 = arith.constant 0 : index
    %60 = vector.load %arg9[%c0_41, %c0_42] : memref<72x256xf32, #tpu.memory_space<vmem>>, vector<72x256xf32>
    %cst_43 = arith.constant dense<0.000000e+00> : vector<8x256xf32>
    %61 = tpu.matmul %59, %60, %cst_43 {dimension_numbers = #tpu.dot_dimension_numbers<[1], [0], [0], [1], [0, 0, 1, 1], [], []>} : vector<8x72xf32>, vector<72x256xf32>, vector<8x256xf32> -> vector<8x256xf32>
    %c0_44 = arith.constant 0 : index
    %c0_45 = arith.constant 0 : index
    %62 = vector.load %arg3[%c0_44, %c0_45] : memref<8x1xf32, #tpu.memory_space<vmem>>, vector<8x1xf32>
    %63 = vector.broadcast %62 : vector<8x1xf32> to vector<8x256xf32>
    %64 = arith.addf %61, %63 : vector<8x256xf32>
    %cst_46 = arith.constant dense<0.000000e+00> : vector<8xf32>
    %65 = vector.multi_reduction <add>, %64, %cst_46 [1] : vector<8x256xf32> to vector<8xf32>
    %66 = vector.shape_cast %65 : vector<8xf32> to vector<8x1xf32>
    %cst_47 = arith.constant 2.560000e+02 : f32
    %67 = vector.broadcast %cst_47 : f32 to vector<8x1xf32>
    %68 = arith.divf %66, %67 : vector<8x1xf32>
    %69 = vector.broadcast %68 : vector<8x1xf32> to vector<8x256xf32>
    %70 = arith.subf %64, %69 : vector<8x256xf32>
    %71 = arith.mulf %70, %70 : vector<8x256xf32>
    %cst_48 = arith.constant dense<0.000000e+00> : vector<8xf32>
    %72 = vector.multi_reduction <add>, %71, %cst_48 [1] : vector<8x256xf32> to vector<8xf32>
    %73 = vector.shape_cast %72 : vector<8xf32> to vector<8x1xf32>
    %cst_49 = arith.constant 2.560000e+02 : f32
    %74 = vector.broadcast %cst_49 : f32 to vector<8x1xf32>
    %75 = arith.divf %73, %74 : vector<8x1xf32>
    %76 = vector.broadcast %68 : vector<8x1xf32> to vector<8x256xf32>
    %77 = arith.subf %64, %76 : vector<8x256xf32>
    %cst_50 = arith.constant 9.99999974E-6 : f32
    %78 = vector.broadcast %cst_50 : f32 to vector<8x1xf32>
    %79 = arith.addf %75, %78 : vector<8x1xf32>
    %80 = math.rsqrt %79 : vector<8x1xf32>
    %81 = vector.broadcast %80 : vector<8x1xf32> to vector<8x256xf32>
    %82 = arith.mulf %77, %81 : vector<8x256xf32>
    %cst_51 = arith.constant 0.000000e+00 : f32
    %83 = vector.broadcast %cst_51 : f32 to vector<8x256xf32>
    %84 = arith.maximumf %82, %83 : vector<8x256xf32>
    %c0_52 = arith.constant 0 : index
    %c128_53 = arith.constant 128 : index
    %85 = vector.load %arg7[%c0_52, %c128_53] : memref<8x512xf32, #tpu.memory_space<vmem>>, vector<8x256xf32>
    tpu.vector_store %arg7[%c0_52, %c128_53], %84 {strides = array<i32>} : memref<8x512xf32, #tpu.memory_space<vmem>>, vector<8x256xf32>,
    %c0_54 = arith.constant 0 : index
    %c112_55 = arith.constant 112 : index
    %86 = vector.load %arg7[%c0_54, %c112_55] : memref<8x512xf32, #tpu.memory_space<vmem>>, vector<8x256xf32>
    %c0_56 = arith.constant 0 : index
    %c144_57 = arith.constant 144 : index
    %87 = vector.load %arg7[%c0_56, %c144_57] : memref<8x512xf32, #tpu.memory_space<vmem>>, vector<8x256xf32>
    %88 = arith.select %24, %87, %86 : vector<8x256xi1>, vector<8x256xf32>
    %89 = arith.select %26, %86, %87 : vector<8x256xi1>, vector<8x256xf32>
    %c0_58 = arith.constant 0 : index
    %c128_59 = arith.constant 128 : index
    %90 = vector.load %arg8[%c0_58, %c128_59] : memref<8x512xf32, #tpu.memory_space<vmem>>, vector<8x256xf32>
    tpu.vector_store %arg8[%c0_58, %c128_59], %88 {strides = array<i32>} : memref<8x512xf32, #tpu.memory_space<vmem>>, vector<8x256xf32>,
    %c0_60 = arith.constant 0 : index
    %c129_61 = arith.constant 129 : index
    %91 = vector.load %arg8[%c0_60, %c129_61] : memref<8x512xf32, #tpu.memory_space<vmem>>, vector<8x256xf32>
    %c0_62 = arith.constant 0 : index
    %c127_63 = arith.constant 127 : index
    %92 = vector.load %arg8[%c0_62, %c127_63] : memref<8x512xf32, #tpu.memory_space<vmem>>, vector<8x256xf32>
    %93 = arith.select %20, %91, %92 : vector<8x256xi1>, vector<8x256xf32>
    %94 = arith.select %22, %92, %91 : vector<8x256xi1>, vector<8x256xf32>
    %c0_64 = arith.constant 0 : index
    %c0_65 = arith.constant 0 : index
    %95 = vector.load %arg9[%c0_64, %c0_65] : memref<72x256xf32, #tpu.memory_space<vmem>>, vector<8x256xf32>
    tpu.vector_store %arg9[%c0_64, %c0_65], %93 {strides = array<i32>} : memref<72x256xf32, #tpu.memory_space<vmem>>, vector<8x256xf32>,
    %c8_66 = arith.constant 8 : index
    %c0_67 = arith.constant 0 : index
    %96 = vector.load %arg9[%c8_66, %c0_67] : memref<72x256xf32, #tpu.memory_space<vmem>>, vector<8x256xf32>
    tpu.vector_store %arg9[%c8_66, %c0_67], %88 {strides = array<i32>} : memref<72x256xf32, #tpu.memory_space<vmem>>, vector<8x256xf32>,
    %c16_68 = arith.constant 16 : index
    %c0_69 = arith.constant 0 : index
    %97 = vector.load %arg9[%c16_68, %c0_69] : memref<72x256xf32, #tpu.memory_space<vmem>>, vector<8x256xf32>
    tpu.vector_store %arg9[%c16_68, %c0_69], %94 {strides = array<i32>} : memref<72x256xf32, #tpu.memory_space<vmem>>, vector<8x256xf32>,
    %c0_70 = arith.constant 0 : index
    %c129_71 = arith.constant 129 : index
    %98 = vector.load %arg7[%c0_70, %c129_71] : memref<8x512xf32, #tpu.memory_space<vmem>>, vector<8x256xf32>
    %c0_72 = arith.constant 0 : index
    %c127_73 = arith.constant 127 : index
    %99 = vector.load %arg7[%c0_72, %c127_73] : memref<8x512xf32, #tpu.memory_space<vmem>>, vector<8x256xf32>
    %100 = arith.select %20, %98, %99 : vector<8x256xi1>, vector<8x256xf32>
    %101 = arith.select %22, %99, %98 : vector<8x256xi1>, vector<8x256xf32>
    %c24_74 = arith.constant 24 : index
    %c0_75 = arith.constant 0 : index
    %102 = vector.load %arg9[%c24_74, %c0_75] : memref<72x256xf32, #tpu.memory_space<vmem>>, vector<8x256xf32>
    tpu.vector_store %arg9[%c24_74, %c0_75], %100 {strides = array<i32>} : memref<72x256xf32, #tpu.memory_space<vmem>>, vector<8x256xf32>,
    %c32_76 = arith.constant 32 : index
    %c0_77 = arith.constant 0 : index
    %103 = vector.load %arg9[%c32_76, %c0_77] : memref<72x256xf32, #tpu.memory_space<vmem>>, vector<8x256xf32>
    tpu.vector_store %arg9[%c32_76, %c0_77], %84 {strides = array<i32>} : memref<72x256xf32, #tpu.memory_space<vmem>>, vector<8x256xf32>,
    %c40_78 = arith.constant 40 : index
    %c0_79 = arith.constant 0 : index
    %104 = vector.load %arg9[%c40_78, %c0_79] : memref<72x256xf32, #tpu.memory_space<vmem>>, vector<8x256xf32>
    tpu.vector_store %arg9[%c40_78, %c0_79], %101 {strides = array<i32>} : memref<72x256xf32, #tpu.memory_space<vmem>>, vector<8x256xf32>,
    %c0_80 = arith.constant 0 : index
    %c128_81 = arith.constant 128 : index
    %105 = vector.load %arg8[%c0_80, %c128_81] : memref<8x512xf32, #tpu.memory_space<vmem>>, vector<8x256xf32>
    tpu.vector_store %arg8[%c0_80, %c128_81], %89 {strides = array<i32>} : memref<8x512xf32, #tpu.memory_space<vmem>>, vector<8x256xf32>,
    %c0_82 = arith.constant 0 : index
    %c129_83 = arith.constant 129 : index
    %106 = vector.load %arg8[%c0_82, %c129_83] : memref<8x512xf32, #tpu.memory_space<vmem>>, vector<8x256xf32>
    %c0_84 = arith.constant 0 : index
    %c127_85 = arith.constant 127 : index
    %107 = vector.load %arg8[%c0_84, %c127_85] : memref<8x512xf32, #tpu.memory_space<vmem>>, vector<8x256xf32>
    %108 = arith.select %20, %106, %107 : vector<8x256xi1>, vector<8x256xf32>
    %109 = arith.select %22, %107, %106 : vector<8x256xi1>, vector<8x256xf32>
    %c48_86 = arith.constant 48 : index
    %c0_87 = arith.constant 0 : index
    %110 = vector.load %arg9[%c48_86, %c0_87] : memref<72x256xf32, #tpu.memory_space<vmem>>, vector<8x256xf32>
    tpu.vector_store %arg9[%c48_86, %c0_87], %108 {strides = array<i32>} : memref<72x256xf32, #tpu.memory_space<vmem>>, vector<8x256xf32>,
    %c56_88 = arith.constant 56 : index
    %c0_89 = arith.constant 0 : index
    %111 = vector.load %arg9[%c56_88, %c0_89] : memref<72x256xf32, #tpu.memory_space<vmem>>, vector<8x256xf32>
    tpu.vector_store %arg9[%c56_88, %c0_89], %89 {strides = array<i32>} : memref<72x256xf32, #tpu.memory_space<vmem>>, vector<8x256xf32>,
    %c64_90 = arith.constant 64 : index
    %c0_91 = arith.constant 0 : index
    %112 = vector.load %arg9[%c64_90, %c0_91] : memref<72x256xf32, #tpu.memory_space<vmem>>, vector<8x256xf32>
    tpu.vector_store %arg9[%c64_90, %c0_91], %109 {strides = array<i32>} : memref<72x256xf32, #tpu.memory_space<vmem>>, vector<8x256xf32>,
    %c0_92 = arith.constant 0 : index
    %c0_93 = arith.constant 0 : index
    %113 = vector.load %arg4[%c0_92, %c0_93] : memref<8x72xf32, #tpu.memory_space<vmem>>, vector<8x72xf32>
    %c0_94 = arith.constant 0 : index
    %c0_95 = arith.constant 0 : index
    %114 = vector.load %arg9[%c0_94, %c0_95] : memref<72x256xf32, #tpu.memory_space<vmem>>, vector<72x256xf32>
    %cst_96 = arith.constant dense<0.000000e+00> : vector<8x256xf32>
    %115 = tpu.matmul %113, %114, %cst_96 {dimension_numbers = #tpu.dot_dimension_numbers<[1], [0], [0], [1], [0, 0, 1, 1], [], []>} : vector<8x72xf32>, vector<72x256xf32>, vector<8x256xf32> -> vector<8x256xf32>
    %c0_97 = arith.constant 0 : index
    %c0_98 = arith.constant 0 : index
    %116 = vector.load %arg5[%c0_97, %c0_98] : memref<8x1xf32, #tpu.memory_space<vmem>>, vector<8x1xf32>
    %117 = vector.broadcast %116 : vector<8x1xf32> to vector<8x256xf32>
    %118 = arith.addf %115, %117 : vector<8x256xf32>
    %cst_99 = arith.constant dense<0.000000e+00> : vector<8xf32>
    %119 = vector.multi_reduction <add>, %118, %cst_99 [1] : vector<8x256xf32> to vector<8xf32>
    %120 = vector.shape_cast %119 : vector<8xf32> to vector<8x1xf32>
    %cst_100 = arith.constant 2.560000e+02 : f32
    %121 = vector.broadcast %cst_100 : f32 to vector<8x1xf32>
    %122 = arith.divf %120, %121 : vector<8x1xf32>
    %123 = vector.broadcast %122 : vector<8x1xf32> to vector<8x256xf32>
    %124 = arith.subf %118, %123 : vector<8x256xf32>
    %125 = arith.mulf %124, %124 : vector<8x256xf32>
    %cst_101 = arith.constant dense<0.000000e+00> : vector<8xf32>
    %126 = vector.multi_reduction <add>, %125, %cst_101 [1] : vector<8x256xf32> to vector<8xf32>
    %127 = vector.shape_cast %126 : vector<8xf32> to vector<8x1xf32>
    %cst_102 = arith.constant 2.560000e+02 : f32
    %128 = vector.broadcast %cst_102 : f32 to vector<8x1xf32>
    %129 = arith.divf %127, %128 : vector<8x1xf32>
    %130 = vector.broadcast %122 : vector<8x1xf32> to vector<8x256xf32>
    %131 = arith.subf %118, %130 : vector<8x256xf32>
    %cst_103 = arith.constant 9.99999974E-6 : f32
    %132 = vector.broadcast %cst_103 : f32 to vector<8x1xf32>
    %133 = arith.addf %129, %132 : vector<8x1xf32>
    %134 = math.rsqrt %133 : vector<8x1xf32>
    %135 = vector.broadcast %134 : vector<8x1xf32> to vector<8x256xf32>
    %136 = arith.mulf %131, %135 : vector<8x256xf32>
    %cst_104 = arith.constant 0.000000e+00 : f32
    %137 = vector.broadcast %cst_104 : f32 to vector<8x256xf32>
    %138 = arith.maximumf %136, %137 : vector<8x256xf32>
    %139 = arith.addf %1, %138 : vector<8x256xf32>
    %c0_105 = arith.constant 0 : index
    %c0_106 = arith.constant 0 : index
    %c0_107 = arith.constant 0 : index
    %140 = vector.load %arg6[%c0_105, %c0_106, %c0_107] : memref<1x8x256xf32, #tpu.memory_space<vmem>>, vector<1x8x256xf32>
    %141 = vector.shape_cast %140 : vector<1x8x256xf32> to vector<8x256xf32>
    %142 = vector.shape_cast %139 : vector<8x256xf32> to vector<1x8x256xf32>
    tpu.vector_store %arg6[%c0_105, %c0_106, %c0_107], %142 {strides = array<i32>} : memref<1x8x256xf32, #tpu.memory_space<vmem>>, vector<1x8x256xf32>,
    return
  }
  func.func @transform_0(%arg0: i32) -> (i32, i32, i32) {
    %c0_i32 = arith.constant 0 : i32
    %c0_i32_0 = arith.constant 0 : i32
    %c0_i32_1 = arith.constant 0 : i32
    return %arg0, %c0_i32, %c0_i32_0 : i32, i32, i32
  }
  func.func @transform_1(%arg0: i32) -> (i32, i32) {
    %c0_i32 = arith.constant 0 : i32
    %c0_i32_0 = arith.constant 0 : i32
    %c0_i32_1 = arith.constant 0 : i32
    return %c0_i32, %c0_i32_0 : i32, i32
  }
  func.func @transform_2(%arg0: i32) -> (i32, i32) {
    %c0_i32 = arith.constant 0 : i32
    %c0_i32_0 = arith.constant 0 : i32
    %c0_i32_1 = arith.constant 0 : i32
    return %c0_i32, %c0_i32_0 : i32, i32
  }
  func.func @transform_3(%arg0: i32) -> (i32, i32) {
    %c0_i32 = arith.constant 0 : i32
    %c0_i32_0 = arith.constant 0 : i32
    %c0_i32_1 = arith.constant 0 : i32
    return %c0_i32, %c0_i32_0 : i32, i32
  }
  func.func @transform_4(%arg0: i32) -> (i32, i32) {
    %c0_i32 = arith.constant 0 : i32
    %c0_i32_0 = arith.constant 0 : i32
    %c0_i32_1 = arith.constant 0 : i32
    return %c0_i32, %c0_i32_0 : i32, i32
  }
  func.func @transform_5(%arg0: i32) -> (i32, i32, i32) {
    %c0_i32 = arith.constant 0 : i32
    %c0_i32_0 = arith.constant 0 : i32
    %c0_i32_1 = arith.constant 0 : i32
    return %arg0, %c0_i32, %c0_i32_0 : i32, i32, i32
  }
}

</mosaic_0001>

<bundles_post_ra>
// kernel: tpu_custom_call.1
= control target key start
LH: loop header
LB: loop body
LE: loop exit
PB: predicated region body
PF: predicated region fallthrough
CT: control target
= control target key end

     0   :  { %10 = vsyncpa [#allocation6], 0  ;;  %s1653_s0 = inlined_call_operand.hbm [shape: f32[2,8,256], index: 0, kind: input, shape index: {}]   ;;  %s1654_s1 = inlined_call_operand.vmem [shape: f32[8,72], index: 1, kind: input, shape index: {}]   ;;  %s1655_s2 = inlined_call_operand.vmem [shape: f32[8,1], index: 2, kind: input, shape index: {}]   ;;  %s1656_s3 = inlined_call_operand.vmem [shape: f32[8,72], index: 3, kind: input, shape index: {}]   ;;  %s1657_s4 = inlined_call_operand.vmem [shape: f32[8,1], index: 4, kind: input, shape index: {}]   ;;  %s1658_s5 = inlined_call_operand.hbm [shape: f32[2,8,256], index: 5, kind: output, shape index: {}]  }
   0x1   :  { %12 = vsyncpa [#allocation6 + $0x1], 0 }
   0x2   :  { %13 = vsyncpa [#allocation7], 0 }
   0x3   :  { %15 = vsyncpa [#allocation7 + $0x1], 0  ;;  %s1254_s18 = smov 0   ;;  %s1256_s19 = smov 0  }
   0x4   :  { %s1258_s20 = smov 0   ;;  %s1260_s21 = smov 0  }
   0x5 LB: > { %s1275_s22 = sadd.s32 4294967295, %s1214_s21   ;;  %s951_s23 = sadd.s32 4294967294, %s1214_s21   ;;  %s1214_s21 = sphi %s1260_s21, %s1681_s21   ;;  %s1210_s20 = sphi %s1258_s20, %s1680_s20   ;;  %s1206_s19 = sphi %s1256_s19, %s1679_s19   ;;  %s1202_s18 = sphi %s1254_s18, %s1678_s18  }
   0x6   : > { %s1279_s24 = sadd.s32 1, %s1214_s21   ;;  %s28_s25 = sadd.s32 1, %s1210_s20 }
   0x7   : > { %s25_s26 = ssub.s32 %s1214_s21, %s1279_s24  ;;  %p35_p0 = scmp.ne.s32.totalorder %s1210_s20, %s1206_s19 }
   0x8   : > { %p26_p1 = scmp.eq.s32.totalorder %s25_s26, 0  ;;  %p36_p2 = scmp.eq.s32.totalorder %s1214_s21, 0 }
   0x9   : > { %p41_p3 = scmp.ne.s32.totalorder %s1206_s19, %s1202_s18  ;;  %p42_p4 = scmp.eq.s32.totalorder %s1275_s22, 0 }
   0xa   : > { %s1291_s27 = scalar_select %p26_p1, %s1210_s20, %s28_s25  }
   0xb   : > { %p1293_p5 = por %p36_p2, %p35_p0  ;;  %p1297_p6 = por %p42_p4, %p41_p3 }
   0xc   : > { %p149_p7 = scmp.eq.s32.totalorder %s1275_s22, 1  ;;  %p155_p8 = scmp.eq.s32.totalorder %s951_s23, 1 }
   0xd   : > { %p1013_p10 = scmp.lt.s32.totalorder %s1214_s21, 2  ;;  %s187_s7 = sand.u32 1, %s1210_s20  }
   0xe   : > { %p1304_p11 = por %p149_p7, %p35_p0  ;;  %p1308_p12 = por %p155_p8, %p41_p3 }
   0xf   : > { %s967_s8 = sshll.u32 %s1214_s21, 8  ;;  %s954_s9 = sshll.u32 %s187_s7, 4 }
  0x10   : > { %s1662_s30 = scalar_select %p1304_p11, 1, 0 }
  0x11   : > { %s1663_s6 = scalar_select %p1308_p12, 1, 0 }
  0x12   : > { %s1317_s12 = scalar_lea.hbm %s1653_s0, %s967_s8  ;;  %s191_s13 = scalar_lea.vmem [#allocation5], %s954_s9 }
  0x13   : > { %s199_s14 = sshll.u32 %s191_s13, 4  ;;  %p1321_p13 = pnand %p1013_p10, %p1293_p5  ;;  %s1325_s14 = int_to_ptr.vmem [resolvable:$true] %s199_s14 }
  0x14   : > { %s188_s16 = scalar_lea.sflag [#allocation6], %s187_s7  ;;  %s1118_s17 = scalar_lea.hbm %s1317_s12, 256 }
  0x15   : > { %p1119_p2 = scmp.ne.s32.totalorder %s1317_s12, %s1118_s17  ;;  %p1120_p3 = pneg %p1321_p13 }
  0x16   : > { %s1123_s26 = scalar_lea.hbm %s1653_s0, 512  ;;  %p1124_p5 = scmp.lt.u32.totalorder %s1317_s12, %s1653_s0 }
  0x17   : > { %p1121_p4 = pnand %p1120_p3, %p1119_p2  ;;  %p1125_p8 = scmp.lt.u32.totalorder %s1123_s26, %s1118_s17 }
  0x18   : > { %p1127_p9 = scmp.lt.u32.totalorder %s1118_s17, %s1317_s12 }
  0x19   : > { %p1122_p7 = pneg %p1121_p4  ;;  %p1126_p10 = por %p1125_p8, %p1124_p5 }
  0x1b   : > { %p1128_p0 = por %p1127_p9, %p1126_p10 }
  0x1d   : > { %p1129_p1 = pnand %p1128_p0, %p1122_p7 }
  0x1f   : > { %1132 = shalt.err (!%p1129_p1)
}
  0x20   : > { %s1133_s7 = scalar_lea.vmem %s1325_s14, 256  ;;  %s1216_s9 = smov [#allocation5]  }
  0x21   : > { %p1134_p2 = scmp.ne.s32.totalorder %s1325_s14, %s1133_s7  ;;  %s1138_s10 = sshll.u32 %s1216_s9, 4  ;;  %s1139_s10 = int_to_ptr.vmem [resolvable:$false] %s1138_s10 }
  0x22   : > { %s1140_s11 = scalar_lea.vmem %s1139_s10, 512  ;;  %p1141_p11 = scmp.lt.s32.totalorder %s1325_s14, %s1139_s10 }
  0x23   : > { %p1136_p4 = pnand %p1134_p2, %p1120_p3  ;;  %p1142_p5 = scmp.lt.s32.totalorder %s1140_s11, %s1133_s7 }
  0x25   : > { %p1137_p12 = pneg %p1136_p4  ;;  %p1143_p8 = por %p1142_p5, %p1141_p11 }
  0x27   : > { %p1144_p9 = pnand %p1143_p8, %p1137_p12 }
  0x29   : > { %1147 = shalt.err (!%p1144_p9)
}
  0x2a   : > { %1008 = dma.hbm_to_vmem [thread:$0]  (!%p1321_p13), %s1317_s12, 256, %s1325_s14, %s188_s16  }
  0x2b   : > { %p1665_p0 = scmp.lt.s32.totalorder %s1214_s21, 3  ;;  %p1666_p1 = scmp.ge.s32.totalorder %s1214_s21, 1 }
  0x2d   : > { %p205_p3 = pnand %p1666_p1, %p1665_p0 }
  0x2e   : > { %s1359_s13 = sand.u32 (!%p205_p3), 1, %s1206_s19  }
  0x2f   : > { %208 = sbr.rel (%p205_p3) target bundleno = 1662 (0x67e), region = 40  ;;  %s958_s17 = sshll.u32 (!%p205_p3), %s1359_s13, 4 }
  0x30   : > { %s211_s23 = scalar_lea.sflag (!%p205_p3), [#allocation6], %s1359_s13  ;;  %s214_s15 = scalar_lea.vmem (!%p205_p3), [#allocation5], %s958_s17 }
  0x36   : > { %1193 = dma.done.wait (%p1297_p6), %s211_s23, 256  }
  0x37   : > { %1195 = vsyncadd (%p1297_p6), %s211_s23, 4294967040  ;;  %v1217_v0 = vmov 0.0   ;;  %s1218_s12 = smov 16   ;;  %v1373_v1 = vld [vmem:[%s214_s15] sm:$0xff]  ;;  %s1219_s14 = smov 112   ;;  %v1379_v2 = vld [vmem:[%s214_s15 + $0x8] sm:$0xff]  ;;  %v243_v4 = vlaneseq }
  0x38   : > { %311 = vrot.lane.b32.xlu1 %v1217_v0, %s1218_s12  ;;  %551 = vmatprep.mubr.f32.mxu0 %v1217_v0  ;;  %v1053_v3 = vpack.i.bf16 %v1373_v1, %v1217_v0  ;;  %s1220_s29 = smov 1   ;;  %s1221_s16 = smov 127   ;;  %vm317_vm0 = vcmask 130048   ;;  %vm303_vm1 = vcmask 916480   ;;  %v1073_v17 = vpack.i.bf16 %v1217_v0, %v1379_v2  ;;  %v477_v24 = vld [vmem:[%s1655_s2] sm:$0xff] }
  0x39   : > { %837 = vmatprep.mubr.f32.mxu1 %v1217_v0  ;;  %297 = vrot.lane.b32.xlu0 %v1373_v1, %s1219_s14  ;;  %v1391_v7 = vand.u32 127, %v243_v4  ;;  %v1222_v23 = vmov 0   ;;  %vm357_vm4 = vcmask 7168   ;;  %vm343_vm5 = vcmask 1039360   ;;  %s968_s23 = sshll.u32 %s1275_s22, 8  ;;  %s240_s15 = scalar_lea.vmem [#allocation8], %s958_s17 }
  0x3a   : > { %1083 = vset.pattern.permute.xlu0 %v1222_v23  ;;  %vm483_vm10 = vcmask 588800   ;;  %s867_s22 = scalar_lea.sflag [#allocation7], %s1359_s13  ;;  %p1675_p11 = scmp.ne.s32.totalorder %s1662_s30, 0 }
  0x3b   : > { %vm274_vm2 = vcmp.lt.s32.totalorder %v1391_v7, 16  ;;  %v1415_v19 = vadd.s32 128, %v1391_v7  ;;  %v250_v35 = vand.u32 15, %v1391_v7  ;;  %s1223_s25 = smov [#allocation8]  }
  0x3c   : > { %313 = vrot.lane.b32.xlu1 %v1373_v1, %s1218_s12  ;;  %s1152_s26 = sshll.u32 %s1223_s25, 4  ;;  %s1153_s26 = int_to_ptr.vmem [resolvable:$false] %s1152_s26 }
  0x3d   : > { %299 = vrot.lane.b32.xlu0 %v1379_v2, %s1219_s14  ;;  %vm277_vm3 = vcmp.ge.s32.totalorder %v1415_v19, 240  ;;  %v257_v27 = vand.u32 15, %v1415_v19  ;;  %vm1452_vm8 = vcmp.eq.s32.totalorder %v250_v35, 0  ;;  %vm1456_vm9 = vcmp.eq.s32.totalorder %v250_v35, 15  ;;  %s1154_s28 = scalar_lea.vmem %s1153_s26, 512 }
  0x3f   : > { %vm1439_vm6 = vcmp.eq.s32.totalorder %v257_v27, 0  ;;  %vm1444_vm7 = vcmp.eq.s32.totalorder %v257_v27, 15 }
  0x40   : > { %301 = vrot.lane.b32.xlu1 %v1217_v0, %s1219_s14 }
  0x41   : > { %315 = vrot.lane.b32.xlu0 %v1379_v2, %s1218_s12 }
  0x44   : > { %1054 = vrot.lane.b32.xlu1 %v1053_v3, %s1220_s29 }
  0x45   : > { %1059 = vrot.lane.b32.xlu0 %v1053_v3, %s1221_s16 }
  0xaa   : > { %v312_v5 = vpop.permute.xlu1 %311 }
  0xab   : > { %v298_v6 = vpop.permute.xlu0 %297 }
  0xae   : > { %v314_v9 = vpop.permute.xlu1 %313 }
  0xaf   : > { %v300_v8 = vpop.permute.xlu0 %299  ;;  %v318_v10 = vsel %vm317_vm0, %v312_v5, %v314_v9 }
  0xb0   : > { %v1396_v11 = vsel %vm303_vm1, %v298_v6, %v300_v8 }
  0xb1   : > { %v1401_v13 = vsel %vm274_vm2, %v1396_v11, %v318_v10 }
  0xb2   : > { %v1078_v18 = vpack.i.bf16 %v1379_v2, %v1401_v13  ;;  %v302_v20 = vpop.permute.xlu1 %301 }
  0xb3   : > { %v316_v12 = vpop.permute.xlu0 %315  ;;  %v305_v21 = vsel %vm303_vm1, %v300_v8, %v302_v20 }
  0xb4   : > { %v319_v14 = vsel %vm317_vm0, %v314_v9, %v316_v12 }
  0xb5   : > { %v1068_v15 = vpack.i.bf16 %v319_v14, %v1401_v13  ;;  %v1063_v16 = vpack.i.bf16 %v1217_v0, %v319_v14  ;;  %v1425_v22 = vsel %vm277_vm3, %v319_v14, %v305_v21 }
  0xb6   : > { %v1055_v25 = vpop.permute.xlu1 %1054 }
  0xb7   : > { %1069 = vrot.lane.b32.xlu1 %v1068_v15, %s1220_s29  ;;  %1064 = vrot.lane.b32.xlu0 %v1063_v16, %s1221_s16  ;;  %v1060_v26 = vpop.permute.xlu0 %1059  ;;  %v1057_v39 = vunpack.i.h.bf16 %v1055_v25  ;;  %v1056_v40 = vunpack.i.l.bf16 %v1055_v25 }
  0xb8   : > { %v1061_v41 = vunpack.i.l.bf16 %v1060_v26  ;;  %v1062_v49 = vunpack.i.h.bf16 %v1060_v26 }
  0xbb   : > { %1074 = vrot.lane.b32.xlu1 %v1073_v17, %s1220_s29  ;;  %1079 = vrot.lane.b32.xlu0 %v1078_v18, %s1221_s16 }
  0xbf   : > { %429 = vrot.lane.b32.xlu1 %v1217_v0, %s1221_s16  ;;  %440 = vrot.lane.b32.xlu0 %v1396_v11, %s1220_s29 }
  0xc3   : > { %442 = vrot.lane.b32.xlu1 %v1425_v22, %s1220_s29  ;;  %427 = vrot.lane.b32.xlu0 %v1425_v22, %s1221_s16 }
  0xc7   : > { %438 = vrot.lane.b32.xlu1 %v1217_v0, %s1220_s29  ;;  %425 = vrot.lane.b32.xlu0 %v1396_v11, %s1221_s16 }
  0xcb   : > { %480 = vperm.xlu0 %1083, %v477_v24  }
 0x129   : > { %v1070_v28 = vpop.permute.xlu1 %1069  ;;  %v1065_v29 = vpop.permute.xlu0 %1064 }
 0x12a   : > { %v1072_v31 = vunpack.i.h.bf16 %v1070_v28  ;;  %v1071_v32 = vunpack.i.l.bf16 %v1070_v28  ;;  %v1067_v33 = vunpack.i.h.bf16 %v1065_v29  ;;  %v1066_v34 = vunpack.i.l.bf16 %v1065_v29  ;;  %v458_v29 = vld [vmem:[%s1654_s1] sm:$0xff] }
 0x12c   : > { %v345_v37 = vsel %vm343_vm5, %v1066_v34, %v1067_v33  ;;  %v359_v38 = vsel %vm357_vm4, %v1071_v32, %v1072_v31  ;;  %v358_v55 = vsel %vm357_vm4, %v1056_v40, %v1071_v32 }
 0x12d   : > { %v1075_v42 = vpop.permute.xlu1 %1074  ;;  %v1080_v43 = vpop.permute.xlu0 %1079  ;;  %v363_v44 = vsel %vm1439_vm6, %v345_v37, %v359_v38  ;;  %v365_v56 = vsel %vm1444_vm7, %v359_v38, %v345_v37 }
 0x12e   : > { %v1077_v45 = vunpack.i.h.bf16 %v1075_v42  ;;  %v1076_v46 = vunpack.i.l.bf16 %v1075_v42  ;;  %v1082_v47 = vunpack.i.h.bf16 %v1080_v43  ;;  %v1081_v48 = vunpack.i.l.bf16 %v1080_v43 }
 0x12f   : > { %v969_v50 = vpack.c.bf16 %v319_v14, %v363_v44 }
 0x130   : > { %v401_v53 = vsel %vm357_vm4, %v1057_v39, %v1076_v46  ;;  %v388_v54 = vsel %vm343_vm5, %v1082_v47, %v1061_v41  ;;  %v400_v57 = vsel %vm357_vm4, %v1077_v45, %v1057_v39  ;;  %v387_v58 = vsel %vm343_vm5, %v1062_v49, %v1082_v47 }
 0x131   : > { %970 = vmatprep.subr.bf16.mxu0 %v969_v50  ;;  %v430_v59 = vpop.permute.xlu1 %429  ;;  %v441_v60 = vpop.permute.xlu0 %440  ;;  %v344_v61 = vsel %vm343_vm5, %v1081_v48, %v1066_v34  ;;  %v405_v62 = vsel %vm1439_vm6, %v388_v54, %v401_v53  ;;  %v404_v6 = vsel %vm1452_vm8, %v387_v58, %v400_v57  ;;  %v407_v10 = vsel %vm1444_vm7, %v401_v53, %v388_v54 }
 0x132   : > { %v362_v63 = vsel %vm1452_vm8, %v344_v61, %v358_v55  ;;  %v973_v3 = vpack.c.bf16 %v405_v62, %v365_v56  ;;  %v364_v5 = vsel %vm1456_vm9, %v358_v55, %v344_v61  ;;  %v406_v16 = vsel %vm1456_vm9, %v400_v57, %v387_v58 }
 0x133   : > { %v971_v4 = vpack.c.bf16 %v1401_v13, %v362_v63  ;;  %v975_v15 = vpack.c.bf16 %v404_v6, %v364_v5  ;;  %v977_v13 = vpack.c.bf16 %v407_v10, %v1379_v2  ;;  %v979_v24 = vpack.c.bf16 %v406_v16, %v1373_v1  ;;  %v764_v10 = vld [vmem:[%s1657_s4] sm:$0xff] }
 0x135   : > { %972 = vmatpush1.bf16.msra.mxu0 %v971_v4  ;;  %v443_v8 = vpop.permute.xlu1 %442  ;;  %v428_v9 = vpop.permute.xlu0 %427 }
 0x136   : > { %v445_v12 = vsel %vm357_vm4, %v441_v60, %v443_v8  ;;  %v432_v14 = vsel %vm343_vm5, %v428_v9, %v430_v59  ;;  %974 = vmatprep.subr.bf16.mxu0 %v973_v3 }
 0x137   : > { %v449_v17 = vsel %vm1439_vm6, %v432_v14, %v445_v12  ;;  %v451_v28 = vsel %vm1444_vm7, %v445_v12, %v432_v14 }
 0x138   : > { %v981_v26 = vpack.c.bf16 %v1425_v22, %v449_v17 }
 0x139   : > { %976 = vmatpush1.bf16.msra.mxu0 %v975_v15  ;;  %v439_v18 = vpop.permute.xlu1 %438  ;;  %v426_v20 = vpop.permute.xlu0 %425 }
 0x13a   : > { %v444_v21 = vsel %vm357_vm4, %v439_v18, %v441_v60  ;;  %v431_v23 = vsel %vm343_vm5, %v426_v20, %v428_v9  ;;  %978 = vmatprep.subr.bf16.mxu0 %v977_v13 }
 0x13b   : > { %v448_v25 = vsel %vm1452_vm8, %v431_v23, %v444_v21  ;;  %v450_v31 = vsel %vm1456_vm9, %v444_v21, %v431_v23 }
 0x13c   : > { %v983_v27 = vpack.c.bf16 %v1396_v11, %v448_v25 }
 0x13d   : > { %980 = vmatpush1.bf16.msra.mxu0 %v979_v24 }
 0x13e   : > { %982 = vmatprep.subr.bf16.mxu0 %v981_v26 }
 0x141   : > { %984 = vmatpush1.bf16.msra.mxu0 %v983_v27 }
 0x142   : > { %503 = vmatprep.subr.mxu0 %v451_v28 }
 0x145   : > { %504 = vmatpush1.msra.mxu0 %v450_v31 }
 0x146   : > { %960 = vmatmul.mubr.msk.f32.vlgmr.msra.gmra.mrb[0].mxu0 %vm483_vm10, %v458_v29 }
 0x14a   : > { %v481_v22 = vpop.permute.xlu0 %480 }
 0x219   : > { %v553_v32 = vpop.f32.mrb[0].mxu0 }
 0x21a   : > { %v554_v33 = vadd.f32 %v553_v32, %v481_v22  ;;  %v555_v11 = vpop.f32.mrb[1].mxu0 }
 0x21b   : > { %v556_v34 = vadd.f32 %v555_v11, %v481_v22 }
 0x21d   : > { %v558_v35 = vadd.f32 %v556_v34, %v554_v33 }
 0x21f   : > { %559 = vadd.xlane.f32.xlu1 %v558_v35 }
 0x230   : > { %601 = vrot.lane.b32.xlu1 %v1217_v0, %s1218_s12 }
 0x2ac   : > { %v560_v37 = vpop.xlane.xlu1 %559 }
 0x2ad   : > { %v562_v38 = vmul.f32 0.00390625, %v560_v37 }
 0x2af   : > { %v563_v39 = vsub.f32 %v554_v33, %v562_v38  ;;  %v564_v40 = vsub.f32 %v556_v34, %v562_v38 }
 0x2b0   : > { %v602_v55 = vpop.permute.xlu1 %601 }
 0x2b1   : > { %v565_v41 = vmul.f32 %v563_v39, %v563_v39  ;;  %v566_v42 = vmul.f32 %v564_v40, %v564_v40 }
 0x2b3   : > { %v567_v43 = vadd.f32 %v566_v42, %v565_v41 }
 0x2b5   : > { %568 = vadd.xlane.f32.xlu0 %v567_v43 }
 0x342   : > { %v569_v44 = vpop.xlane.xlu0 %568 }
 0x343   : > { %v570_v45 = vmul.f32 0.00390625, %v569_v44 }
 0x345   : > { %v571_v46 = vadd.f32 1e-05, %v570_v45 }
 0x347   : > { %1114 = vrsqrt.f32 %v571_v46 }
 0x351   : > { %v1115_v47 = vpop.eup %1114 }
 0x352   : > { %v574_v48 = vmul.f32 %v1115_v47, %v564_v40  ;;  %v573_v49 = vmul.f32 %v1115_v47, %v563_v39 }
 0x354   : > { %v1503_v50 = vmax.f32 %v574_v48, 0.0  ;;  %v1505_v53 = vmax.f32 %v573_v49, 0.0 }
 0x356   : > { %590 = vrot.lane.b32.xlu0 %v1503_v50, %s1219_s14  ;;  %588 = vrot.lane.b32.xlu1 %v1505_v53, %s1219_s14  ;;  %v1089_v54 = vpack.i.bf16 %v1505_v53, %v1217_v0  ;;  %v1104_v6 = vpack.i.bf16 %v1217_v0, %v1503_v50 }
 0x35a   : > { %605 = vrot.lane.b32.xlu0 %v1503_v50, %s1218_s12  ;;  %603 = vrot.lane.b32.xlu1 %v1505_v53, %s1218_s12  ;;  %s881_s12 = sshll.u32 %s240_s15, 4  ;;  %s1611_s12 = int_to_ptr.vmem [resolvable:$true] %s881_s12 }
 0x35b   : > { %s1148_s17 = scalar_lea.vmem %s1611_s12, 256  ;;  %p1155_p7 = scmp.lt.s32.totalorder %s1611_s12, %s1153_s26 }
 0x35c   : > { %p1149_p6 = scmp.ne.s32.totalorder %s1611_s12, %s1148_s17  ;;  %p1156_p10 = scmp.lt.s32.totalorder %s1154_s28, %s1148_s17 }
 0x35e   : > { %1090 = vrot.lane.b32.xlu0 %v1089_v54, %s1221_s16  ;;  %592 = vrot.lane.b32.xlu1 %v1217_v0, %s1219_s14  ;;  %p1150_p12 = pnand %p1149_p6, %p1675_p11  ;;  %p1157_p2 = por %p1156_p10, %p1155_p7 }
 0x360   : > { %p1151_p13 = pneg %p1150_p12 }
 0x362   : > { %1085 = vrot.lane.b32.xlu1 %v1089_v54, %s1220_s29  ;;  %p1158_p4 = pnand %p1157_p2, %p1151_p13 }
 0x3c8   : > { %v591_v56 = vpop.permute.xlu0 %590  ;;  %v589_v57 = vpop.permute.xlu1 %588 }
 0x3c9   : > { %v1522_v60 = vsel %vm303_vm1, %v589_v57, %v591_v56 }
 0x3cc   : > { %v606_v58 = vpop.permute.xlu0 %605  ;;  %v604_v59 = vpop.permute.xlu1 %603 }
 0x3cd   : > { %v607_v61 = vsel %vm317_vm0, %v602_v55, %v604_v59  ;;  %v608_v62 = vsel %vm317_vm0, %v604_v59, %v606_v58 }
 0x3ce   : > { %v611_v63 = vsel %vm274_vm2, %v1522_v60, %v607_v61  ;;  %v1094_v3 = vpack.i.bf16 %v1217_v0, %v608_v62 }
 0x3cf   : > { %v1099_v4 = vpack.i.bf16 %v608_v62, %v611_v63  ;;  %v1109_v5 = vpack.i.bf16 %v1503_v50, %v611_v63 }
 0x3d0   : > { %1095 = vrot.lane.b32.xlu0 %v1094_v3, %s1221_s16  ;;  %v593_v8 = vpop.permute.xlu1 %592  ;;  %v1091_v19 = vpop.permute.xlu0 %1090 }
 0x3d1   : > { %1100 = vrot.lane.b32.xlu1 %v1099_v4, %s1220_s29  ;;  %v595_v7 = vsel %vm303_vm1, %v591_v56, %v593_v8  ;;  %v1093_v21 = vunpack.i.h.bf16 %v1091_v19  ;;  %v1092_v23 = vunpack.i.l.bf16 %v1091_v19 }
 0x3d2   : > { %v1544_v9 = vsel %vm277_vm3, %v608_v62, %v595_v7 }
 0x3d4   : > { %1110 = vrot.lane.b32.xlu0 %v1109_v5, %s1221_s16  ;;  %v1086_v12 = vpop.permute.xlu1 %1085 }
 0x3d5   : > { %1105 = vrot.lane.b32.xlu1 %v1104_v6, %s1220_s29  ;;  %v1087_v25 = vunpack.i.l.bf16 %v1086_v12  ;;  %v1088_v31 = vunpack.i.h.bf16 %v1086_v12 }
 0x3d8   : > { %727 = vrot.lane.b32.xlu0 %v1522_v60, %s1220_s29 }
 0x3d9   : > { %716 = vrot.lane.b32.xlu1 %v1217_v0, %s1221_s16 }
 0x3dc   : > { %714 = vrot.lane.b32.xlu0 %v1544_v9, %s1221_s16 }
 0x3dd   : > { %729 = vrot.lane.b32.xlu1 %v1544_v9, %s1220_s29 }
 0x3e0   : > { %712 = vrot.lane.b32.xlu0 %v1522_v60, %s1221_s16  ;;  %s1609_s16 = scalar_lea.hbm %s1658_s5, %s968_s23 }
 0x3e1   : > { %725 = vrot.lane.b32.xlu1 %v1217_v0, %s1220_s29 }
 0x3e4   : > { %767 = vperm.xlu0 %1083, %v764_v10  }
 0x442   : > { %v1096_v14 = vpop.permute.xlu0 %1095 }
 0x443   : > { %v1098_v15 = vunpack.i.h.bf16 %v1096_v14  ;;  %v1097_v13 = vunpack.i.l.bf16 %v1096_v14  ;;  %v1101_v16 = vpop.permute.xlu1 %1100 }
 0x444   : > { %v1103_v17 = vunpack.i.h.bf16 %v1101_v16  ;;  %v1102_v18 = vunpack.i.l.bf16 %v1101_v16 }
 0x445   : > { %v633_v20 = vsel %vm343_vm5, %v1097_v13, %v1098_v15 }
 0x446   : > { %v1111_v24 = vpop.permute.xlu0 %1110  ;;  %v646_v0 = vsel %vm357_vm4, %v1102_v18, %v1103_v17  ;;  %v645_v37 = vsel %vm357_vm4, %v1087_v25, %v1102_v18 }
 0x447   : > { %v1113_v26 = vunpack.i.h.bf16 %v1111_v24  ;;  %v1112_v27 = vunpack.i.l.bf16 %v1111_v24  ;;  %v1106_v28 = vpop.permute.xlu1 %1105  ;;  %v650_v29 = vsel %vm1439_vm6, %v633_v20, %v646_v0  ;;  %v652_v44 = vsel %vm1444_vm7, %v646_v0, %v633_v20 }
 0x448   : > { %v1108_v22 = vunpack.i.h.bf16 %v1106_v28  ;;  %v1107_v32 = vunpack.i.l.bf16 %v1106_v28  ;;  %v985_v33 = vpack.c.bf16 %v608_v62, %v650_v29 }
 0x449   : > { %v674_v11 = vsel %vm343_vm5, %v1093_v21, %v1113_v26  ;;  %v675_v34 = vsel %vm343_vm5, %v1113_v26, %v1092_v23  ;;  %v632_v35 = vsel %vm343_vm5, %v1112_v27, %v1097_v13 }
 0x44a   : > { %v687_v38 = vsel %vm357_vm4, %v1108_v22, %v1088_v31  ;;  %v688_v39 = vsel %vm357_vm4, %v1088_v31, %v1107_v32  ;;  %v728_v40 = vpop.permute.xlu0 %727  ;;  %986 = vmatprep.subr.bf16.mxu1 %v985_v33  ;;  %v649_v41 = vsel %vm1452_vm8, %v632_v35, %v645_v37  ;;  %v651_v47 = vsel %vm1456_vm9, %v645_v37, %v632_v35 }
 0x44b   : > { %v717_v42 = vpop.permute.xlu1 %716  ;;  %v987_v43 = vpack.c.bf16 %v611_v63, %v649_v41  ;;  %v692_v45 = vsel %vm1439_vm6, %v675_v34, %v688_v39  ;;  %v691_v48 = vsel %vm1452_vm8, %v674_v11, %v687_v38  ;;  %v694_v49 = vsel %vm1444_vm7, %v688_v39, %v675_v34 }
 0x44c   : > { %v989_v46 = vpack.c.bf16 %v692_v45, %v652_v44  ;;  %v991_v57 = vpack.c.bf16 %v691_v48, %v651_v47  ;;  %v993_v59 = vpack.c.bf16 %v694_v49, %v1503_v50  ;;  %v693_v61 = vsel %vm1456_vm9, %v687_v38, %v674_v11 }
 0x44d   : > { %988 = vmatpush1.bf16.msra.mxu1 %v987_v43  ;;  %v995_v5 = vpack.c.bf16 %v693_v61, %v1505_v53  ;;  %v745_v53 = vld [vmem:[%s1656_s3] sm:$0xff] }
 0x44e   : > { %v715_v54 = vpop.permute.xlu0 %714  ;;  %990 = vmatprep.subr.bf16.mxu1 %v989_v46 }
 0x44f   : > { %v719_v55 = vsel %vm343_vm5, %v715_v54, %v717_v42  ;;  %v730_v56 = vpop.permute.xlu1 %729 }
 0x450   : > { %v732_v58 = vsel %vm357_vm4, %v728_v40, %v730_v56 }
 0x451   : > { %v736_v62 = vsel %vm1439_vm6, %v719_v55, %v732_v58  ;;  %992 = vmatpush1.bf16.msra.mxu1 %v991_v57  ;;  %v738_v7 = vsel %vm1444_vm7, %v732_v58, %v719_v55 }
 0x452   : > { %v713_v63 = vpop.permute.xlu0 %712  ;;  %994 = vmatprep.subr.bf16.mxu1 %v993_v59  ;;  %v997_v8 = vpack.c.bf16 %v1544_v9, %v736_v62 }
 0x453   : > { %v718_v3 = vsel %vm343_vm5, %v713_v63, %v715_v54  ;;  %v726_v4 = vpop.permute.xlu1 %725 }
 0x454   : > { %v731_v6 = vsel %vm357_vm4, %v726_v4, %v728_v40 }
 0x455   : > { %v735_v50 = vsel %vm1452_vm8, %v718_v3, %v731_v6  ;;  %996 = vmatpush1.bf16.msra.mxu1 %v995_v5  ;;  %v737_v10 = vsel %vm1456_vm9, %v731_v6, %v718_v3 }
 0x456   : > { %998 = vmatprep.subr.bf16.mxu1 %v997_v8  ;;  %v999_v30 = vpack.c.bf16 %v1522_v60, %v735_v50 }
 0x459   : > { %1000 = vmatpush1.bf16.msra.mxu1 %v999_v30 }
 0x45a   : > { %789 = vmatprep.subr.mxu1 %v738_v7 }
 0x45d   : > { %790 = vmatpush1.msra.mxu1 %v737_v10 }
 0x45e   : > { %961 = vmatmul.mubr.msk.f32.vlgmr.msra.gmra.mrb[0].mxu1 %vm483_vm10, %v745_v53 }
 0x463   : > { %v768_v51 = vpop.permute.xlu0 %767 }
 0x531   : > { %v839_v9 = vpop.f32.mrb[0].mxu1 }
 0x532   : > { %v840_v19 = vadd.f32 %v839_v9, %v768_v51  ;;  %v841_v12 = vpop.f32.mrb[1].mxu1 }
 0x533   : > { %v842_v60 = vadd.f32 %v841_v12, %v768_v51 }
 0x535   : > { %v844_v14 = vadd.f32 %v842_v60, %v840_v19 }
 0x537   : > { %845 = vadd.xlane.f32.xlu1 %v844_v14 }
 0x5c4   : > { %v846_v36 = vpop.xlane.xlu1 %845 }
 0x5c5   : > { %v847_v15 = vmul.f32 0.00390625, %v846_v36 }
 0x5c7   : > { %v848_v13 = vsub.f32 %v840_v19, %v847_v15  ;;  %v849_v16 = vsub.f32 %v842_v60, %v847_v15 }
 0x5c9   : > { %v850_v17 = vmul.f32 %v848_v13, %v848_v13  ;;  %v851_v18 = vmul.f32 %v849_v16, %v849_v16 }
 0x5cb   : > { %v852_v52 = vadd.f32 %v851_v18, %v850_v17 }
 0x5cd   : > { %853 = vadd.xlane.f32.xlu0 %v852_v52 }
 0x65a   : > { %v854_v20 = vpop.xlane.xlu0 %853 }
 0x65b   : > { %v855_v21 = vmul.f32 0.00390625, %v854_v20 }
 0x65d   : > { %v856_v23 = vadd.f32 1e-05, %v855_v21 }
 0x65f   : > { %1116 = vrsqrt.f32 %v856_v23 }
 0x669   : > { %v1117_v24 = vpop.eup %1116 }
 0x66a   : > { %v858_v0 = vmul.f32 %v1117_v24, %v848_v13  ;;  %v859_v25 = vmul.f32 %v1117_v24, %v849_v16 }
 0x66c   : > { %v860_v26 = vmax.f32 %v858_v0, 0.0  ;;  %v861_v27 = vmax.f32 %v859_v25, 0.0 }
 0x66e   : > { %v862_v28 = vadd.f32 %v860_v26, %v1373_v1  ;;  %v863_v29 = vadd.f32 %v861_v27, %v1379_v2 }
 0x670   : > { %864 = vst [vmem:[%s240_s15] sm:$0xff] %v862_v28  ;;  %865 = vst [vmem:[%s240_s15 + $0x8] sm:$0xff] %v863_v29 }
 0x671   : > { %1161 = shalt.err (!%p1158_p4)
}
 0x672   : > { %s1162_s13 = scalar_lea.hbm %s1609_s16, 256  ;;  %s1166_s9 = scalar_lea.hbm %s1658_s5, 512 }
 0x673   : > { %p1163_p5 = scmp.ne.s32.totalorder %s1609_s16, %s1162_s13  ;;  %p1167_p0 = scmp.lt.u32.totalorder %s1609_s16, %s1658_s5 }
 0x674   : > { %p1168_p1 = scmp.lt.u32.totalorder %s1166_s9, %s1162_s13  ;;  %p1170_p6 = scmp.lt.u32.totalorder %s1162_s13, %s1609_s16 }
 0x675   : > { %p1164_p8 = pnand %p1163_p5, %p1675_p11 }
 0x676   : > { %p1169_p3 = por %p1168_p1, %p1167_p0 }
 0x677   : > { %p1165_p9 = pneg %p1164_p8 }
 0x678   : > { %p1171_p12 = por %p1170_p6, %p1169_p3 }
 0x67a   : > { %p1172_p13 = pnand %p1171_p12, %p1165_p9 }
 0x67c   : > { %1175 = shalt.err (!%p1172_p13)
}
 0x67d   : > { %1003 = dma.vmem_to_hbm [thread:$0]  (%p1675_p11), %s1611_s12, 256, %s1609_s16, %s867_s22  }
 0x67e PF: > { %s893_s23 = sand.u32 1, %s1202_s18   ;;  %p1676_p7 = scmp.ne.s32.totalorder %s1663_s6, 0 }
 0x67f   : > { %p1677_p10 = scmp.ge.s32.totalorder %s1214_s21, 2  ;;  %s894_s15 = scalar_lea.sflag [#allocation7], %s893_s23 }
 0x681   : > { %p1010_p2 = pnand %p1677_p10, %p1676_p7 }
 0x683   : > { %1197 = dma.done.wait (!%p1010_p2), %s894_s15, 256  }
 0x684   : > { %1199 = vsyncadd (!%p1010_p2), %s894_s15, 4294967040  ;;  %p18_p4 = scmp.ge.s32.totalorder %s1279_s24, 4   ;;  %s1678_s18 = smov %s1206_s19 }
 0x685   : > { %s1679_s19 = smov %s1210_s20  ;;  %s1680_s20 = smov %s1291_s27 }
 0x686   : > { %s1681_s21 = smov %s1279_s24  ;;  %20 = sbr.rel (!%p18_p4) target bundleno = 5 (0x5), region = 85 }
 0x68d   :  { %899 = vsyncpa [#allocation6], 1 }
 0x68e   :  { %901 = vsyncpa [#allocation6 + $0x1], 1 }
 0x68f   :  { %902 = vsyncpa [#allocation7], 1 }
 0x690   :  { %904 = vsyncpa [#allocation7 + $0x1], 1 }

</bundles_post_ra>
